<compile_context>
chip_gen: v6e
topology: v6e:2x2x1
jax: 0.10.0
libtpu: 0.0.40
codegen_flags: <defaults>
</compile_context>

<pallas_src>
import functools

import jax
import jax.numpy as jnp
from jax.experimental import pallas as pl
from jax.experimental.pallas import tpu as pltpu

_LN_EPS = 1e-5          # nn.LayerNorm default
_LANE = 128             # TPU lane width


def _round_up(v, m):
    return (v + m - 1) // m * m


# ----------------------------------------------------------------------------
# Parameter construction (mirrors the PyTorch init: xavier_normal_ Linear
# weights, zero biases, LayerNorm gamma=1 / beta=0).  Done once, outside the
# hot path: weights pre-transposed (in, out), pre-cast to bf16, fc3 padded to
# a lane-dense width, small vectors packed into one (8, P) f32 slab.
# ----------------------------------------------------------------------------
def _xavier_normal(key, out_dim, in_dim):
    std = (2.0 / (in_dim + out_dim)) ** 0.5
    return jax.random.normal(key, (out_dim, in_dim), dtype=jnp.float32) * std


def make_encoder_params(key, m, n, b, alpha=1):
    N = m * n
    H = 16 * alpha
    out_pad = _round_up(b, _LANE)
    P = max(H, out_pad)
    k1, k2, k3 = jax.random.split(key, 3)

    w1 = _xavier_normal(k1, H, N)        # nn.Linear(N, H).weight  (out, in)
    w2 = _xavier_normal(k2, H, H)
    w3 = _xavier_normal(k3, b, H)
    w3t_pad = jnp.zeros((H, out_pad), jnp.float32).at[:, :b].set(w3.T)

    # rows: 0=b1, 1=gamma1, 2=beta1, 3=b2, 4=gamma2, 5=beta2, 6=b3(pad), 7=unused
    vec = jnp.zeros((8, P), jnp.float32)
    vec = vec.at[1, :H].set(1.0)         # gamma1
    vec = vec.at[4, :H].set(1.0)         # gamma2

    return {
        "w1t": w1.T.astype(jnp.bfloat16),        # (N, H)
        "w2t": w2.T.astype(jnp.bfloat16),        # (H, H)
        "w3t": w3t_pad.astype(jnp.bfloat16),     # (H, out_pad), zero-padded cols
        "vec": vec,                              # (8, P) f32 packed vectors
        "out_dim": b,
    }


# ----------------------------------------------------------------------------
# Fused kernel: one batch tile per grid step, all params VMEM-resident.
# ----------------------------------------------------------------------------
def _encoder_kernel(H, OUT_PAD, x_ref, w1t_ref, w2t_ref, w3t_ref, vec_ref, o_ref):
    inv_h = jnp.float32(1.0 / H)                 # compile-time constant

    def ln_tanh(h, g, be):
        # one-pass stats: two independent cross-lane reductions pipeline on XLU;
        # rsqrt/tanh go to the EUP slot.
        s1 = jnp.sum(h, axis=-1, keepdims=True)
        s2 = jnp.sum(h * h, axis=-1, keepdims=True)
        mu = s1 * inv_h
        var = s2 * inv_h - mu * mu
        hn = (h - mu) * jax.lax.rsqrt(var + _LN_EPS)
        return jnp.tanh(hn * g + be)

    vec = vec_ref[...]
    b1, g1, be1 = vec[0:1, :H], vec[1:2, :H], vec[2:3, :H]
    b2, g2, be2 = vec[3:4, :H], vec[4:5, :H], vec[5:6, :H]
    b3 = vec[6:7, :OUT_PAD]

    # bf16 matmul operands (MXU-native), f32 accumulation; LN/tanh stay f32.
    x = x_ref[...].astype(jnp.bfloat16)
    h = jnp.dot(x, w1t_ref[...], preferred_element_type=jnp.float32) + b1
    h = ln_tanh(h, g1, be1)
    h = jnp.dot(h.astype(jnp.bfloat16), w2t_ref[...],
                preferred_element_type=jnp.float32) + b2
    h = ln_tanh(h, g2, be2)
    o_ref[...] = jnp.dot(h.astype(jnp.bfloat16), w3t_ref[...],
                         preferred_element_type=jnp.float32) + b3


def encoder_forward(x, params, *, tm=256):
    """x: (batch, m, n) float32. Returns (batch, 1, b), matching encoderNet."""
    batch = x.shape[0]
    xf = x.reshape(batch, -1).astype(jnp.float32)   # the x.view(-1, 1, N) flatten
    N = xf.shape[1]
    H = params["w1t"].shape[1]
    OUT_PAD = params["w3t"].shape[1]
    B = params["out_dim"]
    P = params["vec"].shape[1]
    assert params["w1t"].shape == (N, H)

    # Pick batch tile: multiple of 8; prefer >=2 grid steps so the "parallel"
    # axis can actually split across v7x's two TensorCores.
    bp8 = _round_up(batch, 8)
    tm_eff = min(_round_up(tm, 8), bp8)
    if bp8 <= tm_eff and bp8 >= 16:
        tm_eff = _round_up(pl.cdiv(bp8, 2), 8)
    grid = pl.cdiv(batch, tm_eff)
    batch_pad = grid * tm_eff
    if batch_pad != batch:
        xf = jnp.pad(xf, ((0, batch_pad - batch), (0, 0)))

    resident = lambda i: (0, 0)                     # params: same block every step

    flops = 2 * batch_pad * (N * H + H * H + H * OUT_PAD)
    bytes_accessed = (4 * batch_pad * (N + OUT_PAD)
                      + 2 * (N * H + H * H + H * OUT_PAD)   # bf16 weights
                      + 4 * 8 * P)

    out = pl.pallas_call(
        functools.partial(_encoder_kernel, H, OUT_PAD),
        out_shape=jax.ShapeDtypeStruct((batch_pad, OUT_PAD), jnp.float32),
        grid=(grid,),
        in_specs=[
            pl.BlockSpec((tm_eff, N), lambda i: (i, 0)),   # x: tiled over batch
            pl.BlockSpec((N, H), resident),                # W1^T  (bf16)
            pl.BlockSpec((H, H), resident),                # W2^T  (bf16)
            pl.BlockSpec((H, OUT_PAD), resident),          # W3^T  (bf16, padded)
            pl.BlockSpec((8, P), resident),                # packed b/gamma/beta
        ],
        out_specs=pl.BlockSpec((tm_eff, OUT_PAD), lambda i: (i, 0)),
        compiler_params=pltpu.CompilerParams(
            dimension_semantics=("parallel",),             # shard tiles across TCs
        ),
        cost_estimate=pl.CostEstimate(
            flops=flops,
            transcendentals=2 * batch_pad * H,             # two tanh layers
            bytes_accessed=bytes_accessed,
        ),
    )(xf, params["w1t"], params["w2t"], params["w3t"], params["vec"])

    return out[:batch, :B].reshape(batch, 1, B)


# ----------------------------------------------------------------------------
# Pure-JAX reference (exactly the encoderNet forward, f32 throughout)
# ----------------------------------------------------------------------------
def encoder_ref(x, params):
    batch = x.shape[0]
    xf = x.reshape(batch, -1).astype(jnp.float32)
    H = params["w1t"].shape[1]
    B = params["out_dim"]
    w1t = params["w1t"].astype(jnp.float32)
    w2t = params["w2t"].astype(jnp.float32)
    w3t = params["w3t"].astype(jnp.float32)[:, :B]
    vec = params["vec"]
    b1, g1, be1 = vec[0:1, :H], vec[1:2, :H], vec[2:3, :H]
    b2, g2, be2 = vec[3:4, :H], vec[4:5, :H], vec[5:6, :H]
    b3 = vec[6:7, :B]

    def ln(h, g, be):
        mu = h.mean(-1, keepdims=True)
        var = ((h - mu) ** 2).mean(-1, keepdims=True)
        return (h - mu) / jnp.sqrt(var + _LN_EPS) * g + be

    h = jnp.tanh(ln(xf @ w1t + b1, g1, be1))
    h = jnp.tanh(ln(h @ w2t + b2, g2, be2))
    y = h @ w3t + b3
    return y.reshape(batch, 1, B)


if __name__ == "__main__":
    key = jax.random.PRNGKey(0)
    k_p, k_x = jax.random.split(key)

    # Small, lane-friendly shapes consistent with the module:
    M_DIM, N_DIM = 16, 8      # input m x n -> N = 128 (full lane width)
    ALPHA = 8                 # hidden = 16 * ALPHA = 128 (lane-dense hidden)
    B_LAT = 32                # latent dim b (padded to 128 inside the kernel)
    BATCH = 128               # auto-split into 2 batch tiles of 64 -> grid=(2,)

    params = make_encoder_params(k_p, M_DIM, N_DIM, B_LAT, ALPHA)
    x = jax.random.normal(k_x, (BATCH, M_DIM, N_DIM), dtype=jnp.float32)

    y = encoder_forward(x, params)
    y = jax.block_until_ready(y)

    y_ref = encoder_ref(x, params)
    assert y.shape == (BATCH, 1, B_LAT)
    err = float(jnp.max(jnp.abs(y - y_ref)))
    assert err < 5e-2, f"mismatch vs reference: max abs err {err}"

    print("KERNEL_OK")
</pallas_src>

<mosaic_0001>
module attributes {stable_mosaic.version = 11 : i64} {
  func.func @_encoder_kernel(%arg0: i32, %arg1: memref<64x128xf32, #tpu.memory_space<vmem>>, %arg2: memref<128x128xbf16, #tpu.memory_space<vmem>>, %arg3: memref<128x128xbf16, #tpu.memory_space<vmem>>, %arg4: memref<128x128xbf16, #tpu.memory_space<vmem>>, %arg5: memref<8x128xf32, #tpu.memory_space<vmem>>, %arg6: memref<64x128xf32, #tpu.memory_space<vmem>>) attributes {dimension_semantics = [#tpu.dimension_semantics<parallel>], iteration_bounds = array<i64: 2>, scalar_prefetch = 0 : i64, scratch_operands = 0 : i64, tpu.core_type = #tpu.core_type<tc>, window_params = [{transform_indices = @transform_0, window_bounds = array<i64: 64, 128>}, {pipeline_mode = #tpu.pipeline_mode<synchronous>, transform_indices = @transform_1, window_bounds = array<i64: 128, 128>}, {pipeline_mode = #tpu.pipeline_mode<synchronous>, transform_indices = @transform_2, window_bounds = array<i64: 128, 128>}, {pipeline_mode = #tpu.pipeline_mode<synchronous>, transform_indices = @transform_3, window_bounds = array<i64: 128, 128>}, {pipeline_mode = #tpu.pipeline_mode<synchronous>, transform_indices = @transform_4, window_bounds = array<i64: 8, 128>}, {transform_indices = @transform_5, window_bounds = array<i64: 64, 128>}]} {
    %c0 = arith.constant 0 : index
    %c0_0 = arith.constant 0 : index
    %0 = vector.load %arg5[%c0, %c0_0] : memref<8x128xf32, #tpu.memory_space<vmem>>, vector<8x128xf32>
    %1 = vector.extract_strided_slice %0 {offsets = [0, 0], sizes = [1, 128], strides = [1, 1]} : vector<8x128xf32> to vector<1x128xf32>
    %2 = vector.extract_strided_slice %0 {offsets = [1, 0], sizes = [1, 128], strides = [1, 1]} : vector<8x128xf32> to vector<1x128xf32>
    %3 = vector.extract_strided_slice %0 {offsets = [2, 0], sizes = [1, 128], strides = [1, 1]} : vector<8x128xf32> to vector<1x128xf32>
    %4 = vector.extract_strided_slice %0 {offsets = [3, 0], sizes = [1, 128], strides = [1, 1]} : vector<8x128xf32> to vector<1x128xf32>
    %5 = vector.extract_strided_slice %0 {offsets = [4, 0], sizes = [1, 128], strides = [1, 1]} : vector<8x128xf32> to vector<1x128xf32>
    %6 = vector.extract_strided_slice %0 {offsets = [5, 0], sizes = [1, 128], strides = [1, 1]} : vector<8x128xf32> to vector<1x128xf32>
    %7 = vector.extract_strided_slice %0 {offsets = [6, 0], sizes = [1, 128], strides = [1, 1]} : vector<8x128xf32> to vector<1x128xf32>
    %c0_1 = arith.constant 0 : index
    %c0_2 = arith.constant 0 : index
    %8 = vector.load %arg1[%c0_1, %c0_2] : memref<64x128xf32, #tpu.memory_space<vmem>>, vector<64x128xf32>
    %9 = arith.truncf %8 : vector<64x128xf32> to vector<64x128xbf16>
    %c0_3 = arith.constant 0 : index
    %c0_4 = arith.constant 0 : index
    %10 = vector.load %arg2[%c0_3, %c0_4] : memref<128x128xbf16, #tpu.memory_space<vmem>>, vector<128x128xbf16>
    %cst = arith.constant dense<0.000000e+00> : vector<64x128xf32>
    %11 = tpu.matmul %9, %10, %cst {dimension_numbers = #tpu.dot_dimension_numbers<[1], [0], [0], [1], [0, 0, 1, 1], [], []>} : vector<64x128xbf16>, vector<128x128xbf16>, vector<64x128xf32> -> vector<64x128xf32>
    %12 = vector.broadcast %1 : vector<1x128xf32> to vector<64x128xf32>
    %13 = arith.addf %11, %12 : vector<64x128xf32>
    %cst_5 = arith.constant dense<0.000000e+00> : vector<64xf32>
    %14 = vector.multi_reduction <add>, %13, %cst_5 [1] : vector<64x128xf32> to vector<64xf32>
    %15 = vector.shape_cast %14 : vector<64xf32> to vector<64x1xf32>
    %16 = arith.mulf %13, %13 : vector<64x128xf32>
    %cst_6 = arith.constant dense<0.000000e+00> : vector<64xf32>
    %17 = vector.multi_reduction <add>, %16, %cst_6 [1] : vector<64x128xf32> to vector<64xf32>
    %18 = vector.shape_cast %17 : vector<64xf32> to vector<64x1xf32>
    %cst_7 = arith.constant 7.812500e-03 : f32
    %19 = vector.broadcast %cst_7 : f32 to vector<64x1xf32>
    %20 = arith.mulf %15, %19 : vector<64x1xf32>
    %cst_8 = arith.constant 7.812500e-03 : f32
    %21 = vector.broadcast %cst_8 : f32 to vector<64x1xf32>
    %22 = arith.mulf %18, %21 : vector<64x1xf32>
    %23 = arith.mulf %20, %20 : vector<64x1xf32>
    %24 = arith.subf %22, %23 : vector<64x1xf32>
    %25 = vector.broadcast %20 : vector<64x1xf32> to vector<64x128xf32>
    %26 = arith.subf %13, %25 : vector<64x128xf32>
    %cst_9 = arith.constant 9.99999974E-6 : f32
    %27 = vector.broadcast %cst_9 : f32 to vector<64x1xf32>
    %28 = arith.addf %24, %27 : vector<64x1xf32>
    %29 = math.rsqrt %28 : vector<64x1xf32>
    %30 = vector.broadcast %29 : vector<64x1xf32> to vector<64x128xf32>
    %31 = arith.mulf %26, %30 : vector<64x128xf32>
    %32 = vector.broadcast %2 : vector<1x128xf32> to vector<64x128xf32>
    %33 = arith.mulf %31, %32 : vector<64x128xf32>
    %34 = vector.broadcast %3 : vector<1x128xf32> to vector<64x128xf32>
    %35 = arith.addf %33, %34 : vector<64x128xf32>
    %36 = math.tanh %35 : vector<64x128xf32>
    %37 = arith.truncf %36 : vector<64x128xf32> to vector<64x128xbf16>
    %c0_10 = arith.constant 0 : index
    %c0_11 = arith.constant 0 : index
    %38 = vector.load %arg3[%c0_10, %c0_11] : memref<128x128xbf16, #tpu.memory_space<vmem>>, vector<128x128xbf16>
    %cst_12 = arith.constant dense<0.000000e+00> : vector<64x128xf32>
    %39 = tpu.matmul %37, %38, %cst_12 {dimension_numbers = #tpu.dot_dimension_numbers<[1], [0], [0], [1], [0, 0, 1, 1], [], []>} : vector<64x128xbf16>, vector<128x128xbf16>, vector<64x128xf32> -> vector<64x128xf32>
    %40 = vector.broadcast %4 : vector<1x128xf32> to vector<64x128xf32>
    %41 = arith.addf %39, %40 : vector<64x128xf32>
    %cst_13 = arith.constant dense<0.000000e+00> : vector<64xf32>
    %42 = vector.multi_reduction <add>, %41, %cst_13 [1] : vector<64x128xf32> to vector<64xf32>
    %43 = vector.shape_cast %42 : vector<64xf32> to vector<64x1xf32>
    %44 = arith.mulf %41, %41 : vector<64x128xf32>
    %cst_14 = arith.constant dense<0.000000e+00> : vector<64xf32>
    %45 = vector.multi_reduction <add>, %44, %cst_14 [1] : vector<64x128xf32> to vector<64xf32>
    %46 = vector.shape_cast %45 : vector<64xf32> to vector<64x1xf32>
    %cst_15 = arith.constant 7.812500e-03 : f32
    %47 = vector.broadcast %cst_15 : f32 to vector<64x1xf32>
    %48 = arith.mulf %43, %47 : vector<64x1xf32>
    %cst_16 = arith.constant 7.812500e-03 : f32
    %49 = vector.broadcast %cst_16 : f32 to vector<64x1xf32>
    %50 = arith.mulf %46, %49 : vector<64x1xf32>
    %51 = arith.mulf %48, %48 : vector<64x1xf32>
    %52 = arith.subf %50, %51 : vector<64x1xf32>
    %53 = vector.broadcast %48 : vector<64x1xf32> to vector<64x128xf32>
    %54 = arith.subf %41, %53 : vector<64x128xf32>
    %cst_17 = arith.constant 9.99999974E-6 : f32
    %55 = vector.broadcast %cst_17 : f32 to vector<64x1xf32>
    %56 = arith.addf %52, %55 : vector<64x1xf32>
    %57 = math.rsqrt %56 : vector<64x1xf32>
    %58 = vector.broadcast %57 : vector<64x1xf32> to vector<64x128xf32>
    %59 = arith.mulf %54, %58 : vector<64x128xf32>
    %60 = vector.broadcast %5 : vector<1x128xf32> to vector<64x128xf32>
    %61 = arith.mulf %59, %60 : vector<64x128xf32>
    %62 = vector.broadcast %6 : vector<1x128xf32> to vector<64x128xf32>
    %63 = arith.addf %61, %62 : vector<64x128xf32>
    %64 = math.tanh %63 : vector<64x128xf32>
    %65 = arith.truncf %64 : vector<64x128xf32> to vector<64x128xbf16>
    %c0_18 = arith.constant 0 : index
    %c0_19 = arith.constant 0 : index
    %66 = vector.load %arg4[%c0_18, %c0_19] : memref<128x128xbf16, #tpu.memory_space<vmem>>, vector<128x128xbf16>
    %cst_20 = arith.constant dense<0.000000e+00> : vector<64x128xf32>
    %67 = tpu.matmul %65, %66, %cst_20 {dimension_numbers = #tpu.dot_dimension_numbers<[1], [0], [0], [1], [0, 0, 1, 1], [], []>} : vector<64x128xbf16>, vector<128x128xbf16>, vector<64x128xf32> -> vector<64x128xf32>
    %68 = vector.broadcast %7 : vector<1x128xf32> to vector<64x128xf32>
    %69 = arith.addf %67, %68 : vector<64x128xf32>
    %c0_21 = arith.constant 0 : index
    %c0_22 = arith.constant 0 : index
    %70 = vector.load %arg6[%c0_21, %c0_22] : memref<64x128xf32, #tpu.memory_space<vmem>>, vector<64x128xf32>
    tpu.vector_store %arg6[%c0_21, %c0_22], %69 {strides = array<i32>} : memref<64x128xf32, #tpu.memory_space<vmem>>, vector<64x128xf32>,
    return
  }
  func.func @transform_0(%arg0: i32) -> (i32, i32) {
    %c0_i32 = arith.constant 0 : i32
    %c0_i32_0 = arith.constant 0 : i32
    return %arg0, %c0_i32 : i32, i32
  }
  func.func @transform_1(%arg0: i32) -> (i32, i32) {
    %c0_i32 = arith.constant 0 : i32
    %c0_i32_0 = arith.constant 0 : i32
    %c0_i32_1 = arith.constant 0 : i32
    return %c0_i32, %c0_i32_0 : i32, i32
  }
  func.func @transform_2(%arg0: i32) -> (i32, i32) {
    %c0_i32 = arith.constant 0 : i32
    %c0_i32_0 = arith.constant 0 : i32
    %c0_i32_1 = arith.constant 0 : i32
    return %c0_i32, %c0_i32_0 : i32, i32
  }
  func.func @transform_3(%arg0: i32) -> (i32, i32) {
    %c0_i32 = arith.constant 0 : i32
    %c0_i32_0 = arith.constant 0 : i32
    %c0_i32_1 = arith.constant 0 : i32
    return %c0_i32, %c0_i32_0 : i32, i32
  }
  func.func @transform_4(%arg0: i32) -> (i32, i32) {
    %c0_i32 = arith.constant 0 : i32
    %c0_i32_0 = arith.constant 0 : i32
    %c0_i32_1 = arith.constant 0 : i32
    return %c0_i32, %c0_i32_0 : i32, i32
  }
  func.func @transform_5(%arg0: i32) -> (i32, i32) {
    %c0_i32 = arith.constant 0 : i32
    %c0_i32_0 = arith.constant 0 : i32
    return %arg0, %c0_i32 : i32, i32
  }
}

</mosaic_0001>

<bundles_post_ra>
// kernel: tpu_custom_call.1
= control target key start
LH: loop header
LB: loop body
LE: loop exit
PB: predicated region body
PF: predicated region fallthrough
CT: control target
= control target key end

     0   :  { %10 = vsyncpa [#allocation3], 0  ;;  %s2089_s0 = inlined_call_operand.hbm [shape: f32[128,128], index: 0, kind: input, shape index: {}]   ;;  %s2090_s1 = inlined_call_operand.hbm [shape: bf16[128,128], index: 1, kind: input, shape index: {}]   ;;  %s2091_s2 = inlined_call_operand.hbm [shape: bf16[128,128], index: 2, kind: input, shape index: {}]   ;;  %s2092_s3 = inlined_call_operand.hbm [shape: bf16[128,128], index: 3, kind: input, shape index: {}]   ;;  %s2093_s4 = inlined_call_operand.hbm [shape: f32[8,128], index: 4, kind: input, shape index: {}]   ;;  %s2094_s5 = inlined_call_operand.hbm [shape: f32[128,128], index: 5, kind: output, shape index: {}]  }
   0x1   :  { %12 = vsyncpa [#allocation3 + $0x1], 0 }
   0x2   :  { %13 = vsyncpa [#allocation6], 0 }
   0x3   :  { %14 = vsyncpa [#allocation9], 0 }
   0x4   :  { %15 = vsyncpa [#allocation4], 0 }
   0x5   :  { %17 = vsyncpa [#allocation4 + $0x1], 0  ;;  %s1728_s18 = smov 0   ;;  %s1730_s19 = smov 0  }
   0x6   :  { %s1732_s20 = smov 0   ;;  %s1734_s21 = smov 0  }
   0x7 LB: > { %s1749_s22 = sadd.s32 4294967295, %s1684_s21   ;;  %s1127_s23 = sadd.s32 4294967294, %s1684_s21   ;;  %s1684_s21 = sphi %s1734_s21, %s2118_s21   ;;  %s1680_s20 = sphi %s1732_s20, %s2117_s20   ;;  %s1676_s19 = sphi %s1730_s19, %s2116_s19   ;;  %s1672_s18 = sphi %s1728_s18, %s2115_s18  }
   0x8   : > { %p43_p0 = scmp.ne.s32.totalorder %s1676_s19, %s1672_s18  ;;  %p2095_p1 = scmp.eq.s32.totalorder %s1749_s22, 0 }
   0x9   : > { %p157_p3 = scmp.eq.s32.totalorder %s1127_s23, 1  ;;  %p1128_p5 = scmp.ge.s32.totalorder %s1684_s21, 1 }
   0xa   : > { %p1758_p4 = por %p2095_p1, %p43_p0  ;;  %p164_p7 = scmp.lt.s32.totalorder %s1684_s21, 3 }
   0xb   : > { %p1763_p6 = por %p157_p3, %p43_p0  ;;  %s1686_s27 = smov [#allocation5]  }
   0xc   : > { %s2099_s24 = scalar_select %p1758_p4, 1, 0 }
   0xd   : > { %s2100_s25 = scalar_select %p1763_p6, 1, 0 }
   0xe   : > { %p1768_p8 = pnand %p1128_p5, %p164_p7  ;;  %s176_s28 = sshll.u32 %s1686_s27, 4  ;;  %s177_s28 = int_to_ptr.vmem [resolvable:$true] %s176_s28 }
   0xf   : > { %s1687_s30 = smov [#allocation8]   ;;  %s1688_s7 = smov [#allocation7]  }
  0x10   : > { %s2101_s26 = scalar_select %p1768_p8, 1, 0 }
  0x11   : > { %p1319_p9 = pneg %p1768_p8  ;;  %s202_s6 = sshll.u32 %s1687_s30, 4  ;;  %s203_s6 = int_to_ptr.vmem [resolvable:$true] %s202_s6 }
  0x12   : > { %s189_s8 = sshll.u32 %s1688_s7, 4  ;;  %s1491_s9 = scalar_lea.vmem %s177_s28, 1024  ;;  %s190_s8 = int_to_ptr.vmem [resolvable:$true] %s189_s8 }
  0x13   : > { %p1777_p11 = pnand %p1319_p9, %p2095_p1  ;;  %p1492_p13 = scmp.ne.s32.totalorder %s177_s28, %s1491_s9 }
  0x14   : > { %p1499_p5 = scmp.lt.s32.totalorder %s177_s28, %s177_s28  ;;  %p1500_p7 = scmp.lt.s32.totalorder %s1491_s9, %s1491_s9 }
  0x15   : > { %p1482_p12 = pneg %p1777_p11 }
  0x16   : > { %p1501_p9 = por %p1500_p7, %p1499_p5 }
  0x17   : > { %p1494_p0 = pnand %p1492_p13, %p1482_p12 }
  0x19   : > { %p1495_p3 = pneg %p1494_p0 }
  0x1b   : > { %p1502_p10 = pnand %p1501_p9, %p1495_p3 }
  0x1d   : > { %1505 = shalt.err (!%p1502_p10)
}
  0x1e   : > { %s1689_s10 = smov 64   ;;  %s1690_s11 = smov 4  }
  0x1f   : > { %1322 = dma.hbm_to_vmem [thread:$0]  (!%p1777_p11), %s2090_s1, 1024, %s177_s28, [#allocation6], %s1689_s10, %s1689_s10, %s1690_s11  }
  0x20   : > { %s1517_s14 = scalar_lea.vmem %s203_s6, 1024  ;;  %p1525_p2 = scmp.lt.s32.totalorder %s203_s6, %s203_s6 }
  0x21   : > { %p1518_p1 = scmp.ne.s32.totalorder %s203_s6, %s1517_s14  ;;  %p1526_p6 = scmp.lt.s32.totalorder %s1517_s14, %s1517_s14 }
  0x23   : > { %p1520_p13 = pnand %p1518_p1, %p1482_p12  ;;  %p1527_p5 = por %p1526_p6, %p1525_p2 }
  0x25   : > { %p1521_p0 = pneg %p1520_p13 }
  0x27   : > { %p1528_p3 = pnand %p1527_p5, %p1521_p0 }
  0x29   : > { %1531 = shalt.err (!%p1528_p3)
}
  0x2a   : > { %1328 = dma.hbm_to_vmem [thread:$0]  (!%p1777_p11), %s2092_s3, 1024, %s203_s6, [#allocation9], %s1689_s10, %s1689_s10, %s1690_s11  }
  0x2b   : > { %s1543_s17 = scalar_lea.vmem %s190_s8, 1024  ;;  %p1551_p9 = scmp.lt.s32.totalorder %s190_s8, %s190_s8 }
  0x2c   : > { %p1544_p10 = scmp.ne.s32.totalorder %s190_s8, %s1543_s17  ;;  %p1552_p13 = scmp.lt.s32.totalorder %s1543_s17, %s1543_s17 }
  0x2e   : > { %p1546_p7 = pnand %p1544_p10, %p1482_p12  ;;  %p1553_p4 = por %p1552_p13, %p1551_p9 }
  0x30   : > { %p1547_p1 = pneg %p1546_p7 }
  0x32   : > { %p1554_p2 = pnand %p1553_p4, %p1547_p1 }
  0x34   : > { %1557 = shalt.err (!%p1554_p2)
}
  0x35   : > { %1325 = dma.hbm_to_vmem [thread:$0]  (!%p1777_p11), %s2091_s2, 1024, %s190_s8, [#allocation6], %s1689_s10, %s1689_s10, %s1690_s11  }
  0x36   : > { %s1691_s28 = smov [#allocation10]  }
  0x37   : > { %s216_s30 = sshll.u32 %s1691_s28, 4  ;;  %s217_s30 = int_to_ptr.vmem [resolvable:$true] %s216_s30 }
  0x38   : > { %s1569_s6 = scalar_lea.vmem %s217_s30, 128  ;;  %p1577_p3 = scmp.lt.s32.totalorder %s217_s30, %s217_s30 }
  0x39   : > { %p1570_p6 = scmp.ne.s32.totalorder %s217_s30, %s1569_s6  ;;  %p1578_p10 = scmp.lt.s32.totalorder %s1569_s6, %s1569_s6 }
  0x3b   : > { %p1572_p0 = pnand %p1570_p6, %p1482_p12  ;;  %p1579_p4 = por %p1578_p10, %p1577_p3 }
  0x3d   : > { %p1573_p5 = pneg %p1572_p0 }
  0x3f   : > { %p1580_p7 = pnand %p1579_p4, %p1573_p5 }
  0x41   : > { %1583 = shalt.err (!%p1580_p7)
}
  0x42   : > { %1331 = dma.hbm_to_vmem [thread:$0]  (!%p1777_p11), %s2093_s4, 128, %s217_s30, [#allocation9]  }
  0x43   : > { %s1816_s8 = sadd.s32 1, %s1684_s21   ;;  %s30_s10 = sadd.s32 1, %s1680_s20 }
  0x44   : > { %s27_s29 = ssub.s32 %s1684_s21, %s1816_s8  ;;  %p37_p12 = scmp.ne.s32.totalorder %s1680_s20, %s1676_s19 }
  0x45   : > { %p28_p1 = scmp.eq.s32.totalorder %s27_s29, 0  ;;  %p38_p9 = scmp.eq.s32.totalorder %s1684_s21, 0 }
  0x46   : > { %p2103_p13 = scmp.eq.s32.totalorder %s1749_s22, 1  ;;  %p1344_p6 = scmp.lt.s32.totalorder %s1684_s21, 2 }
  0x47   : > { %s1832_s12 = scalar_select %p28_p1, %s1680_s20, %s30_s10  }
  0x48   : > { %p1826_p2 = por %p2103_p13, %p37_p12  ;;  %p39_p0 = por %p38_p9, %p37_p12 }
  0x49   : > { %s227_s13 = sand.u32 1, %s1680_s20   ;;  %s1173_s15 = sshll.u32 %s1684_s21, 10 }
  0x4a   : > { %s2104_s11 = scalar_select %p1826_p2, 1, 0 }
  0x4b   : > { %s1134_s14 = sshll.u32 %s227_s13, 6  ;;  %s1839_s23 = scalar_lea.hbm %s2089_s0, %s1173_s15 }
  0x4c   : > { %s231_s27 = scalar_lea.vmem [#allocation2], %s1134_s14  ;;  %p1843_p11 = pnand %p1344_p6, %p39_p0 }
  0x4d   : > { %s238_s28 = sshll.u32 %s231_s27, 4  ;;  %s1847_s6 = scalar_lea.sflag [#allocation3], %s227_s13  ;;  %s1841_s28 = int_to_ptr.vmem [resolvable:$true] %s238_s28 }
  0x4e   : > { %s1584_s7 = scalar_lea.hbm %s1839_s23, 1024  ;;  %p1586_p3 = pneg %p1843_p11 }
  0x4f   : > { %p1585_p5 = scmp.ne.s32.totalorder %s1839_s23, %s1584_s7  ;;  %s1589_s29 = scalar_lea.hbm %s2089_s0, 2048 }
  0x50   : > { %p1590_p7 = scmp.lt.s32.totalorder %s1839_s23, %s2089_s0  ;;  %p1591_p12 = scmp.lt.s32.totalorder %s1589_s29, %s1584_s7 }
  0x51   : > { %p1587_p10 = pnand %p1586_p3, %p1585_p5 }
  0x52   : > { %p1592_p1 = por %p1591_p12, %p1590_p7 }
  0x53   : > { %p1588_p4 = pneg %p1587_p10 }
  0x55   : > { %p1593_p9 = pnand %p1592_p1, %p1588_p4 }
  0x57   : > { %1596 = shalt.err (!%p1593_p9)
}
  0x58   : > { %s1597_s13 = scalar_lea.vmem %s1841_s28, 1024  ;;  %s1692_s16 = smov [#allocation2]  }
  0x59   : > { %p1598_p13 = scmp.ne.s32.totalorder %s1841_s28, %s1597_s13  ;;  %s1602_s17 = sshll.u32 %s1692_s16, 4  ;;  %s1603_s17 = int_to_ptr.vmem [resolvable:$false] %s1602_s17 }
  0x5a   : > { %s1604_s27 = scalar_lea.vmem %s1603_s17, 2048  ;;  %p1605_p5 = scmp.lt.s32.totalorder %s1841_s28, %s1603_s17 }
  0x5b   : > { %p1600_p6 = pnand %p1598_p13, %p1586_p3  ;;  %p1606_p10 = scmp.lt.s32.totalorder %s1604_s27, %s1597_s13 }
  0x5d   : > { %p1601_p0 = pneg %p1600_p6  ;;  %p1607_p2 = por %p1606_p10, %p1605_p5 }
  0x5f   : > { %p1608_p8 = pnand %p1607_p2, %p1601_p0 }
  0x61   : > { %1611 = shalt.err (!%p1608_p8)
}
  0x62   : > { %s1693_s7 = smov 128   ;;  %s1694_s9 = smov 8  }
  0x63   : > { %1335 = dma.hbm_to_vmem [thread:$0]  (!%p1843_p11), %s1839_s23, 1024, %s1841_s28, %s1847_s6, %s1693_s7, %s1693_s7, %s1694_s9  }
  0x64   : > { %p2106_p3 = scmp.ne.s32.totalorder %s2101_s26, 0 }
  0x65   : > { %s1871_s10 = sand.u32 (!%p2106_p3), 1, %s1676_s19   ;;  %p2107_p8 = scmp.ne.s32.totalorder (!%p2106_p3), %s2099_s24, 0 }
  0x66   : > { %250 = sbr.rel (%p2106_p3) target bundleno = 1161 (0x489), region = 40  ;;  %s1138_s29 = sshll.u32 (!%p2106_p3), %s1871_s10, 6 }
  0x67   : > { %s253_s14 = scalar_lea.sflag (!%p2106_p3), [#allocation3], %s1871_s10  ;;  %s1877_s15 = scalar_lea.vmem (!%p2106_p3), [#allocation2], %s1138_s29 }
  0x6b   : > { %1655 = dma.done.wait (%p2107_p8), %s253_s14, 1024  }
  0x6c   : > { %1657 = vsyncadd (%p2107_p8), %s253_s14, 4294966272  ;;  %p2108_p2 = scmp.eq.s32.totalorder %s1749_s22, 0 }
  0x6e   : > { %1659 = dma.done.wait (%p2108_p2), [#allocation6], 2048   ;;  %p2109_p11 = pmov %p2108_p2 }
  0x6f   : > { %p2110_p4 = pmov %p2108_p2 }
  0x70   : > { %1661 = vsyncadd (%p2109_p11), [#allocation6], 4294965248 }
  0x71   : > { %1663 = dma.done.wait (%p2110_p4), [#allocation9], 1152   ;;  %p2111_p7 = pmov %p2108_p2 }
  0x72   : > { %v1392_v0 = vld [vmem:[#allocation5 + $0x38] sm:$0xff]   ;;  %v1393_v1 = vld [vmem:[#allocation5 + $0x30] sm:$0xff]   ;;  %v1394_v2 = vld [vmem:[#allocation5 + $0x28] sm:$0xff]   ;;  %v331_v20 = vlaneseq  ;;  %s298_s24 = scalar_lea.vmem [#allocation11], %s1138_s29  ;;  %s1174_s23 = sshll.u32 %s1749_s22, 10 }
  0x73   : > { %1665 = vsyncadd (%p2111_p7), [#allocation9], 4294966144  ;;  %1211 = vmatprep.subr.bf16.mxu0 %v1392_v0  ;;  %v1395_v3 = vld [vmem:[#allocation5 + $0x20] sm:$0xff]   ;;  %v304_v5 = vld [vmem:[%s1877_s15 + $0x8] sm:$0xff]  ;;  %s1016_s26 = sshll.u32 %s298_s24, 4  ;;  %s2046_s6 = scalar_lea.hbm %s2094_s5, %s1174_s23  ;;  %s2041_s26 = int_to_ptr.vmem [resolvable:$true] %s1016_s26 }
  0x74   : > { %1212 = vmatpush3.bf16.msra.mxu0 %v1392_v0  ;;  %v303_v4 = vld [vmem:[%s1877_s15] sm:$0xff]  ;;  %v1396_v7 = vld [vmem:[#allocation5 + $0x18] sm:$0xff]   ;;  %v1397_v8 = vld [vmem:[#allocation5 + $0x10] sm:$0xff]   ;;  %v1899_v21 = vshrl.u32 %v331_v20, 7  ;;  %s1003_s13 = scalar_lea.sflag [#allocation4], %s1871_s10  ;;  %s1612_s16 = scalar_lea.vmem %s2041_s26, 1024 }
  0x75   : > { %1213 = vmatprep.subr.bf16.mxu0 %v1393_v1  ;;  %v311_v6 = vpack.c.bf16 %v304_v5, %v303_v4  ;;  %v1398_v9 = vld [vmem:[#allocation5 + $0x8] sm:$0xff]   ;;  %v1399_v10 = vld [vmem:[#allocation5] sm:$0xff]   ;;  %v305_v11 = vld [vmem:[%s1877_s15 + $0x10] sm:$0xff]  ;;  %p1613_p12 = scmp.ne.s32.totalorder %s2041_s26, %s1612_s16  ;;  %p2112_p1 = scmp.ne.s32.totalorder %s2104_s11, 0 }
  0x76   : > { %v306_v12 = vld [vmem:[%s1877_s15 + $0x18] sm:$0xff]  ;;  %v307_v13 = vld [vmem:[%s1877_s15 + $0x20] sm:$0xff]  ;;  %v308_v14 = vld [vmem:[%s1877_s15 + $0x28] sm:$0xff]  ;;  %v333_v22 = vsub.s32 0, %v1899_v21  ;;  %s1695_s22 = smov [#allocation11]  }
  0x77   : > { %1227 = vmatprep.mubr.bf16.mxu0 %v311_v6  ;;  %v312_v15 = vpack.c.bf16 %v306_v12, %v305_v11  ;;  %v313_v16 = vpack.c.bf16 %v308_v14, %v307_v13  ;;  %v309_v17 = vld [vmem:[%s1877_s15 + $0x30] sm:$0xff]  ;;  %v310_v18 = vld [vmem:[%s1877_s15 + $0x38] sm:$0xff]  ;;  %v1902_v23 = vld [vmem:[#allocation10] sm:$0xff]  ;;  %p1614_p9 = pnand %p1613_p12, %p2112_p1  ;;  %s1616_s17 = sshll.u32 %s1695_s22, 4  ;;  %s1617_s17 = int_to_ptr.vmem [resolvable:$false] %s1616_s17 }
  0x78   : > { %1214 = vmatpush3.bf16.msra.mxu0 %v1393_v1  ;;  %v314_v19 = vpack.c.bf16 %v310_v18, %v309_v17  ;;  %v334_v24 = vrot.slane %v1902_v23, %v333_v22  ;;  %v1400_v49 = vld [vmem:[#allocation7 + $0x38] sm:$0xff]   ;;  %v1401_v50 = vld [vmem:[#allocation7 + $0x30] sm:$0xff]   ;;  %v1402_v51 = vld [vmem:[#allocation7 + $0x28] sm:$0xff]   ;;  %s1618_s27 = scalar_lea.vmem %s1617_s17, 2048  ;;  %p1619_p6 = scmp.lt.s32.totalorder %s2041_s26, %s1617_s17 }
  0x79   : > { %1215 = vmatprep.subr.bf16.mxu0 %v1394_v2  ;;  %1235 = vmatprep.subr.bf16.mxu1 %v1400_v49  ;;  %v1403_v52 = vld [vmem:[#allocation7 + $0x20] sm:$0xff]   ;;  %v1404_v53 = vld [vmem:[#allocation7 + $0x18] sm:$0xff]   ;;  %v1405_v54 = vld [vmem:[#allocation7 + $0x10] sm:$0xff]   ;;  %p1615_p13 = pneg %p1614_p9  ;;  %p1620_p0 = scmp.lt.s32.totalorder %s1618_s27, %s1612_s16 }
  0x7a   : > { %1236 = vmatpush3.bf16.msra.mxu1 %v1400_v49  ;;  %v1406_v55 = vld [vmem:[#allocation7 + $0x8] sm:$0xff]   ;;  %v1407_v56 = vld [vmem:[#allocation7] sm:$0xff]  }
  0x7b   : > { %1237 = vmatprep.subr.bf16.mxu1 %v1401_v50  ;;  %p1621_p5 = por %p1620_p0, %p1619_p6 }
  0x7c   : > { %1216 = vmatpush3.bf16.msra.mxu0 %v1394_v2 }
  0x7d   : > { %1217 = vmatprep.subr.bf16.mxu0 %v1395_v3  ;;  %p1622_p10 = pnand %p1621_p5, %p1615_p13 }
  0x7e   : > { %1238 = vmatpush3.bf16.msra.mxu1 %v1401_v50 }
  0x7f   : > { %1239 = vmatprep.subr.bf16.mxu1 %v1402_v51 }
  0x80   : > { %1218 = vmatpush3.bf16.msra.mxu0 %v1395_v3 }
  0x81   : > { %1219 = vmatprep.subr.bf16.mxu0 %v1396_v7 }
  0x82   : > { %1240 = vmatpush3.bf16.msra.mxu1 %v1402_v51 }
  0x83   : > { %1241 = vmatprep.subr.bf16.mxu1 %v1403_v52 }
  0x84   : > { %1220 = vmatpush3.bf16.msra.mxu0 %v1396_v7 }
  0x85   : > { %1221 = vmatprep.subr.bf16.mxu0 %v1397_v8 }
  0x86   : > { %1242 = vmatpush3.bf16.msra.mxu1 %v1403_v52 }
  0x87   : > { %1243 = vmatprep.subr.bf16.mxu1 %v1404_v53 }
  0x88   : > { %1222 = vmatpush3.bf16.msra.mxu0 %v1397_v8 }
  0x89   : > { %1223 = vmatprep.subr.bf16.mxu0 %v1398_v9 }
  0x8a   : > { %1244 = vmatpush3.bf16.msra.mxu1 %v1404_v53 }
  0x8b   : > { %1245 = vmatprep.subr.bf16.mxu1 %v1405_v54 }
  0x8c   : > { %1224 = vmatpush3.bf16.msra.mxu0 %v1398_v9 }
  0x8d   : > { %1225 = vmatprep.subr.bf16.mxu0 %v1399_v10 }
  0x8e   : > { %1246 = vmatpush3.bf16.msra.mxu1 %v1405_v54 }
  0x8f   : > { %1247 = vmatprep.subr.bf16.mxu1 %v1406_v55 }
  0x90   : > { %1226 = vmatpush3.bf16.msra.mxu0 %v1399_v10 }
  0x92   : > { %1248 = vmatpush3.bf16.msra.mxu1 %v1406_v55 }
  0x93   : > { %1228 = vmatmul.mubr.bf16.vlgmr.msra.gmra.mxu0 %v312_v15  ;;  %1249 = vmatprep.subr.bf16.mxu1 %v1407_v56 }
  0x94   : > { %1231 = vmatprep.mubr.bf16.mxu0 %v313_v16 }
  0x96   : > { %1250 = vmatpush3.bf16.msra.mxu1 %v1407_v56 }
  0x9b   : > { %1232 = vmatmul.mubr.bf16.gmra.mxu0 %v314_v19 }
 0x153   : > { %v1229_v25 = vpop.f32.mrf.mxu0 }
 0x154   : > { %v1905_v26 = vadd.f32 %v1229_v25, %v334_v24 }
 0x155   : > { %v417_v27 = vpop.f32.mrf.mxu0 }
 0x156   : > { %v1907_v28 = vadd.f32 %v417_v27, %v334_v24  ;;  %452 = vadd.xlane.f32.xlu1 %v1905_v26  ;;  %v466_v32 = vmul.f32 %v1905_v26, %v1905_v26 }
 0x157   : > { %v1230_v29 = vpop.f32.mrf.mxu0 }
 0x158   : > { %v1910_v30 = vadd.f32 %v1230_v29, %v334_v24  ;;  %448 = vadd.xlane.f32.xlu0 %v1907_v28  ;;  %v464_v37 = vmul.f32 %v1907_v28, %v1907_v28 }
 0x159   : > { %v420_v31 = vpop.f32.mrf.mxu0 }
 0x15a   : > { %454 = vadd.xlane.f32.xlu1 %v1910_v30  ;;  %v1916_v34 = vadd.f32 %v420_v31, %v334_v24  ;;  %v467_v35 = vmul.f32 %v1910_v30, %v1910_v30 }
 0x15b   : > { %v1233_v33 = vpop.f32.mrf.mxu0 }
 0x15c   : > { %476 = vadd.xlane.f32.xlu0 %v466_v32  ;;  %v465_v39 = vmul.f32 %v1916_v34, %v1916_v34  ;;  %v1926_v41 = vadd.f32 %v1233_v33, %v334_v24 }
 0x15d   : > { %v433_v36 = vpop.f32.mrf.mxu0 }
 0x15e   : > { %478 = vadd.xlane.f32.xlu1 %v467_v35  ;;  %v1933_v44 = vadd.f32 %v433_v36, %v334_v24  ;;  %v470_v48 = vmul.f32 %v1926_v41, %v1926_v41  ;;  %v554_v36 = vsub.s32 1, %v1899_v21 }
 0x15f   : > { %v1234_v38 = vpop.f32.mrf.mxu0 }
 0x160   : > { %472 = vadd.xlane.f32.xlu0 %v464_v37  ;;  %v1924_v40 = vadd.f32 %v1234_v38, %v334_v24  ;;  %v468_v46 = vmul.f32 %v1933_v44, %v1933_v44 }
 0x161   : > { %v436_v42 = vpop.f32.mrf.mxu0 }
 0x162   : > { %474 = vadd.xlane.f32.xlu1 %v465_v39  ;;  %v1930_v43 = vadd.f32 %v436_v42, %v334_v24  ;;  %v471_v47 = vmul.f32 %v1924_v40, %v1924_v40 }
 0x164   : > { %450 = vadd.xlane.f32.xlu0 %v1916_v34  ;;  %v469_v45 = vmul.f32 %v1930_v43, %v1930_v43 }
 0x166   : > { %462 = vadd.xlane.f32.xlu1 %v1924_v40 }
 0x168   : > { %460 = vadd.xlane.f32.xlu0 %v1926_v41 }
 0x16a   : > { %458 = vadd.xlane.f32.xlu1 %v1930_v43 }
 0x16c   : > { %456 = vadd.xlane.f32.xlu0 %v1933_v44 }
 0x16e   : > { %482 = vadd.xlane.f32.xlu1 %v469_v45 }
 0x170   : > { %480 = vadd.xlane.f32.xlu0 %v468_v46 }
 0x172   : > { %486 = vadd.xlane.f32.xlu1 %v471_v47 }
 0x174   : > { %484 = vadd.xlane.f32.xlu0 %v470_v48 }
 0x1df   : > { %v453_v57 = vpop.xlane.xlu1 %452 }
 0x1e0   : > { %v1945_v59 = vmul.f32 0.0078125, %v453_v57  ;;  %v555_v57 = vrot.slane %v1902_v23, %v554_v36 }
 0x1e1   : > { %v449_v58 = vpop.xlane.xlu0 %448 }
 0x1e2   : > { %v506_v63 = vmul.f32 %v1945_v59, %v1945_v59  ;;  %v488_v0 = vmul.f32 0.0078125, %v449_v58  ;;  %v522_v56 = vsub.f32 %v1905_v26, %v1945_v59 }
 0x1e3   : > { %v455_v60 = vpop.xlane.xlu1 %454 }
 0x1e4   : > { %v491_v61 = vmul.f32 0.0078125, %v455_v60  ;;  %v504_v7 = vmul.f32 %v488_v0, %v488_v0  ;;  %v520_v51 = vsub.f32 %v1907_v28, %v488_v0 }
 0x1e5   : > { %v477_v62 = vpop.xlane.xlu0 %476 }
 0x1e6   : > { %v498_v1 = vmul.f32 0.0078125, %v477_v62  ;;  %v507_v3 = vmul.f32 %v491_v61, %v491_v61  ;;  %v523_v39 = vsub.f32 %v1910_v30, %v491_v61  ;;  %v566_v62 = vsub.s32 2, %v1899_v21 }
 0x1e7   : > { %v479_v2 = vpop.xlane.xlu1 %478 }
 0x1e8   : > { %v514_v4 = vsub.f32 %v498_v1, %v506_v63  ;;  %v499_v5 = vmul.f32 0.0078125, %v479_v2 }
 0x1e9   : > { %v473_v6 = vpop.xlane.xlu0 %472 }
 0x1ea   : > { %v515_v8 = vsub.f32 %v499_v5, %v507_v3  ;;  %v496_v9 = vmul.f32 0.0078125, %v473_v6  ;;  %v530_v10 = vadd.f32 1e-05, %v514_v4  ;;  %v567_v5 = vrot.slane %v1902_v23, %v566_v62 }
 0x1eb   : > { %v475_v11 = vpop.xlane.xlu1 %474 }
 0x1ec   : > { %v531_v12 = vadd.f32 1e-05, %v515_v8  ;;  %v512_v13 = vsub.f32 %v496_v9, %v504_v7  ;;  %v497_v18 = vmul.f32 0.0078125, %v475_v11 }
 0x1ed   : > { %v451_v14 = vpop.xlane.xlu0 %450 }
 0x1ee   : > { %1416 = vrsqrt.f32 %v531_v12  ;;  %v528_v15 = vadd.f32 1e-05, %v512_v13  ;;  %v489_v16 = vmul.f32 0.0078125, %v451_v14 }
 0x1ef   : > { %1418 = vrsqrt.f32 %v530_v10  ;;  %v463_v17 = vpop.xlane.xlu1 %462 }
 0x1f0   : > { %1420 = vrsqrt.f32 %v528_v15  ;;  %v505_v19 = vmul.f32 %v489_v16, %v489_v16  ;;  %v1950_v37 = vmul.f32 0.0078125, %v463_v17  ;;  %v521_v6 = vsub.f32 %v1916_v34, %v489_v16 }
 0x1f1   : > { %v461_v20 = vpop.xlane.xlu0 %460 }
 0x1f2   : > { %v513_v22 = vsub.f32 %v497_v18, %v505_v19  ;;  %v494_v48 = vmul.f32 0.0078125, %v461_v20  ;;  %v511_v30 = vmul.f32 %v1950_v37, %v1950_v37 }
 0x1f3   : > { %v459_v24 = vpop.xlane.xlu1 %458 }
 0x1f4   : > { %v529_v25 = vadd.f32 1e-05, %v513_v22  ;;  %v493_v27 = vmul.f32 0.0078125, %v459_v24  ;;  %v510_v0 = vmul.f32 %v494_v48, %v494_v48  ;;  %v527_v24 = vsub.f32 %v1924_v40, %v1950_v37 }
 0x1f5   : > { %v457_v29 = vpop.xlane.xlu0 %456 }
 0x1f6   : > { %1422 = vrsqrt.f32 %v529_v25  ;;  %v492_v31 = vmul.f32 0.0078125, %v457_v29  ;;  %v509_v33 = vmul.f32 %v493_v27, %v493_v27  ;;  %v525_v17 = vsub.f32 %v1930_v43, %v493_v27 }
 0x1f7   : > { %v483_v32 = vpop.xlane.xlu1 %482 }
 0x1f8   : > { %v501_v35 = vmul.f32 0.0078125, %v483_v32  ;;  %v508_v42 = vmul.f32 %v492_v31, %v492_v31  ;;  %v524_v34 = vsub.f32 %v1933_v44, %v492_v31 }
 0x1f9   : > { %v481_v38 = vpop.xlane.xlu0 %480 }
 0x1fa   : > { %v517_v45 = vsub.f32 %v501_v35, %v509_v33  ;;  %v500_v46 = vmul.f32 0.0078125, %v481_v38  ;;  %v526_v33 = vsub.f32 %v1926_v41, %v494_v48 }
 0x1fb   : > { %v1417_v47 = vpop.eup %1416  ;;  %v487_v49 = vpop.xlane.xlu1 %486 }
 0x1fc   : > { %v1419_v50 = vpop.eup %1418  ;;  %v547_v52 = vmul.f32 %v1417_v47, %v523_v39  ;;  %v533_v53 = vadd.f32 1e-05, %v517_v45  ;;  %v516_v54 = vsub.f32 %v500_v46, %v508_v42  ;;  %v503_v58 = vmul.f32 0.0078125, %v487_v49 }
 0x1fd   : > { %v1421_v55 = vpop.eup %1420  ;;  %v485_v60 = vpop.xlane.xlu0 %484  ;;  %v546_v28 = vmul.f32 %v1419_v50, %v522_v56 }
 0x1fe   : > { %v544_v61 = vmul.f32 %v1421_v55, %v520_v51  ;;  %1424 = vrsqrt.f32 %v533_v53  ;;  %v532_v63 = vadd.f32 1e-05, %v516_v54  ;;  %v519_v1 = vsub.f32 %v503_v58, %v511_v30 }
 0x1ff   : > { %v502_v2 = vmul.f32 0.0078125, %v485_v60  ;;  %v559_v3 = vmul.f32 %v555_v57, %v547_v52  ;;  %v558_v8 = vmul.f32 %v555_v57, %v546_v28  ;;  %v606_v53 = vsub.s32 3, %v1899_v21 }
 0x200   : > { %1426 = vrsqrt.f32 %v532_v63  ;;  %v535_v4 = vadd.f32 1e-05, %v519_v1  ;;  %v556_v59 = vmul.f32 %v555_v57, %v544_v61 }
 0x201   : > { %v518_v26 = vsub.f32 %v502_v2, %v510_v0  ;;  %v571_v11 = vadd.f32 %v567_v5, %v559_v3  ;;  %v570_v14 = vadd.f32 %v567_v5, %v558_v8  ;;  %v607_v54 = vrot.slane %v1902_v23, %v606_v53 }
 0x202   : > { %1428 = vrsqrt.f32 %v535_v4  ;;  %v568_v12 = vadd.f32 %v567_v5, %v556_v59 }
 0x203   : > { %v1423_v7 = vpop.eup %1422  ;;  %v534_v9 = vadd.f32 1e-05, %v518_v26 }
 0x204   : > { %v545_v10 = vmul.f32 %v1423_v7, %v521_v6 }
 0x205   : > { %1430 = vrsqrt.f32 %v534_v9 }
 0x206   : > { %v557_v13 = vmul.f32 %v555_v57, %v545_v10  ;;  %1432 = vtanh.f32 %v571_v11 }
 0x207   : > { %1434 = vtanh.f32 %v568_v12  ;;  %v1408_v12 = vld [vmem:[#allocation8 + $0x38] sm:$0xff]  }
 0x208   : > { %v569_v15 = vadd.f32 %v567_v5, %v557_v13  ;;  %1259 = vmatprep.subr.bf16.mxu0 %v1408_v12  ;;  %1283 = vmatprep.subr.bf16.mxu1 %v1408_v12  ;;  %v1409_v13 = vld [vmem:[#allocation8 + $0x30] sm:$0xff]  }
 0x209   : > { %1260 = vmatpush3.bf16.msra.mxu0 %v1408_v12 }
 0x20a   : > { %1436 = vtanh.f32 %v569_v15  ;;  %1261 = vmatprep.subr.bf16.mxu0 %v1409_v13  ;;  %v1411_v15 = vld [vmem:[#allocation8 + $0x20] sm:$0xff]  }
 0x20b   : > { %v1425_v18 = vpop.eup %1424  ;;  %1438 = vtanh.f32 %v570_v14  ;;  %v1410_v14 = vld [vmem:[#allocation8 + $0x28] sm:$0xff]  }
 0x20c   : > { %v549_v16 = vmul.f32 %v1425_v18, %v525_v17  ;;  %v1412_v17 = vld [vmem:[#allocation8 + $0x18] sm:$0xff]   ;;  %v1413_v18 = vld [vmem:[#allocation8 + $0x10] sm:$0xff]  }
 0x20d   : > { %v1427_v19 = vpop.eup %1426  ;;  %1262 = vmatpush3.bf16.msra.mxu0 %v1409_v13 }
 0x20e   : > { %v561_v20 = vmul.f32 %v555_v57, %v549_v16  ;;  %v548_v22 = vmul.f32 %v1427_v19, %v524_v34  ;;  %1263 = vmatprep.subr.bf16.mxu0 %v1410_v14  ;;  %v1414_v34 = vld [vmem:[#allocation8 + $0x8] sm:$0xff]   ;;  %v1415_v16 = vld [vmem:[#allocation8] sm:$0xff]  }
 0x20f   : > { %v1429_v25 = vpop.eup %1428 }
 0x210   : > { %v560_v29 = vmul.f32 %v555_v57, %v548_v22  ;;  %v573_v32 = vadd.f32 %v567_v5, %v561_v20  ;;  %v551_v35 = vmul.f32 %v1429_v25, %v527_v24 }
 0x211   : > { %1264 = vmatpush3.bf16.msra.mxu0 %v1410_v14 }
 0x212   : > { %v1431_v36 = vpop.eup %1430  ;;  %v572_v38 = vadd.f32 %v567_v5, %v560_v29  ;;  %v563_v43 = vmul.f32 %v555_v57, %v551_v35  ;;  %1440 = vtanh.f32 %v573_v32  ;;  %1265 = vmatprep.subr.bf16.mxu0 %v1411_v15 }
 0x213   : > { %v550_v27 = vmul.f32 %v1431_v36, %v526_v33  ;;  %v1433_v44 = vpop.eup %1432 }
 0x214   : > { %1442 = vtanh.f32 %v572_v38  ;;  %v575_v39 = vadd.f32 %v567_v5, %v563_v43  ;;  %v1435_v42 = vpop.eup %1434 }
 0x215   : > { %v562_v31 = vmul.f32 %v555_v57, %v550_v27  ;;  %1266 = vmatpush3.bf16.msra.mxu0 %v1411_v15 }
 0x216   : > { %1444 = vtanh.f32 %v575_v39  ;;  %1267 = vmatprep.subr.bf16.mxu0 %v1412_v17 }
 0x217   : > { %v1437_v45 = vpop.eup %1436  ;;  %v574_v46 = vadd.f32 %v567_v5, %v562_v31 }
 0x218   : > { %v1439_v47 = vpop.eup %1438  ;;  %v584_v40 = vpack.c.bf16 %v1437_v45, %v1435_v42 }
 0x219   : > { %v585_v37 = vpack.c.bf16 %v1433_v44, %v1439_v47  ;;  %1446 = vtanh.f32 %v574_v46  ;;  %1268 = vmatpush3.bf16.msra.mxu0 %v1412_v17 }
 0x21a   : > { %1251 = vmatprep.mubr.bf16.mxu1 %v584_v40  ;;  %1269 = vmatprep.subr.bf16.mxu0 %v1413_v18 }
 0x21b   : > { %1252 = vmatmul.mubr.bf16.vlgmr.msra.gmra.mxu1 %v585_v37 }
 0x21c   : > { %1291 = vmatpush3.bf16.msra.mxu1 %v1408_v12 }
 0x21d   : > { %1284 = vmatprep.subr.bf16.mxu1 %v1409_v13  ;;  %1270 = vmatpush3.bf16.msra.mxu0 %v1413_v18 }
 0x21e   : > { %1271 = vmatprep.subr.bf16.mxu0 %v1414_v34 }
 0x21f   : > { %v1441_v41 = vpop.eup %1440 }
 0x220   : > { %1292 = vmatpush3.bf16.msra.mxu1 %v1409_v13 }
 0x221   : > { %v1443_v48 = vpop.eup %1442  ;;  %1285 = vmatprep.subr.bf16.mxu1 %v1410_v14  ;;  %1272 = vmatpush3.bf16.msra.mxu0 %v1414_v34 }
 0x222   : > { %v586_v49 = vpack.c.bf16 %v1441_v41, %v1443_v48  ;;  %1273 = vmatprep.subr.bf16.mxu0 %v1415_v16 }
 0x223   : > { %v1445_v50 = vpop.eup %1444 }
 0x224   : > { %1255 = vmatprep.mubr.bf16.mxu1 %v586_v49  ;;  %1293 = vmatpush3.bf16.msra.mxu1 %v1410_v14 }
 0x225   : > { %1286 = vmatprep.subr.bf16.mxu1 %v1411_v15  ;;  %1274 = vmatpush3.bf16.msra.mxu0 %v1415_v16 }
 0x226   : > { %v1447_v51 = vpop.eup %1446 }
 0x227   : > { %v587_v52 = vpack.c.bf16 %v1445_v50, %v1447_v51 }
 0x228   : > { %1294 = vmatpush3.bf16.msra.mxu1 %v1411_v15  ;;  %v839_v15 = vsub.s32 5, %v1899_v21 }
 0x229   : > { %1256 = vmatmul.mubr.bf16.gmra.mxu1 %v587_v52  ;;  %1287 = vmatprep.subr.bf16.mxu1 %v1412_v17 }
 0x22c   : > { %1295 = vmatpush3.bf16.msra.mxu1 %v1412_v17 }
 0x22d   : > { %1288 = vmatprep.subr.bf16.mxu1 %v1413_v18 }
 0x230   : > { %1296 = vmatpush3.bf16.msra.mxu1 %v1413_v18 }
 0x231   : > { %1289 = vmatprep.subr.bf16.mxu1 %v1414_v34 }
 0x234   : > { %1297 = vmatpush3.bf16.msra.mxu1 %v1414_v34 }
 0x235   : > { %1290 = vmatprep.subr.bf16.mxu1 %v1415_v16 }
 0x238   : > { %1298 = vmatpush3.bf16.msra.mxu1 %v1415_v16 }
 0x2db   : > { %v1253_v55 = vpop.f32.mrf.mxu1 }
 0x2dc   : > { %v1969_v56 = vadd.f32 %v1253_v55, %v607_v54 }
 0x2dd   : > { %v690_v57 = vpop.f32.mrf.mxu1 }
 0x2de   : > { %725 = vadd.xlane.f32.xlu0 %v1969_v56  ;;  %v1972_v58 = vadd.f32 %v690_v57, %v607_v54  ;;  %v739_v63 = vmul.f32 %v1969_v56, %v1969_v56 }
 0x2df   : > { %v1254_v30 = vpop.f32.mrf.mxu1 }
 0x2e0   : > { %v1974_v60 = vadd.f32 %v1254_v30, %v607_v54  ;;  %v737_v0 = vmul.f32 %v1972_v58, %v1972_v58 }
 0x2e1   : > { %v693_v61 = vpop.f32.mrf.mxu1 }
 0x2e2   : > { %727 = vadd.xlane.f32.xlu1 %v1974_v60  ;;  %721 = vadd.xlane.f32.xlu0 %v1972_v58  ;;  %v1978_v62 = vadd.f32 %v693_v61, %v607_v54  ;;  %v740_v28 = vmul.f32 %v1974_v60, %v1974_v60 }
 0x2e4   : > { %v738_v4 = vmul.f32 %v1978_v62, %v1978_v62 }
 0x2e6   : > { %723 = vadd.xlane.f32.xlu1 %v1978_v62  ;;  %749 = vadd.xlane.f32.xlu0 %v739_v63 }
 0x2e9   : > { %v1257_v1 = vpop.f32.mrf.mxu1 }
 0x2ea   : > { %751 = vadd.xlane.f32.xlu1 %v740_v28  ;;  %745 = vadd.xlane.f32.xlu0 %v737_v0  ;;  %v1987_v3 = vadd.f32 %v1257_v1, %v607_v54 }
 0x2eb   : > { %v706_v2 = vpop.f32.mrf.mxu1 }
 0x2ec   : > { %v1992_v59 = vadd.f32 %v706_v2, %v607_v54  ;;  %v743_v10 = vmul.f32 %v1987_v3, %v1987_v3 }
 0x2ed   : > { %v1258_v26 = vpop.f32.mrf.mxu1 }
 0x2ee   : > { %747 = vadd.xlane.f32.xlu1 %v738_v4  ;;  %733 = vadd.xlane.f32.xlu0 %v1987_v3  ;;  %v1994_v5 = vadd.f32 %v1258_v26, %v607_v54  ;;  %v741_v8 = vmul.f32 %v1992_v59, %v1992_v59  ;;  %v827_v4 = vsub.s32 4, %v1899_v21 }
 0x2ef   : > { %v709_v6 = vpop.f32.mrf.mxu1 }
 0x2f0   : > { %v1998_v7 = vadd.f32 %v709_v6, %v607_v54  ;;  %v744_v11 = vmul.f32 %v1994_v5, %v1994_v5 }
 0x2f2   : > { %735 = vadd.xlane.f32.xlu1 %v1994_v5  ;;  %729 = vadd.xlane.f32.xlu0 %v1992_v59  ;;  %v742_v9 = vmul.f32 %v1998_v7, %v1998_v7 }
 0x2f6   : > { %731 = vadd.xlane.f32.xlu1 %v1998_v7  ;;  %753 = vadd.xlane.f32.xlu0 %v741_v8 }
 0x2fa   : > { %755 = vadd.xlane.f32.xlu1 %v742_v9  ;;  %757 = vadd.xlane.f32.xlu0 %v743_v10 }
 0x2fe   : > { %759 = vadd.xlane.f32.xlu1 %v744_v11 }
 0x367   : > { %v726_v19 = vpop.xlane.xlu0 %725 }
 0x368   : > { %v763_v24 = vmul.f32 0.0078125, %v726_v19 }
 0x36a   : > { %v779_v35 = vmul.f32 %v763_v24, %v763_v24  ;;  %v795_v14 = vsub.f32 %v1969_v56, %v763_v24 }
 0x36b   : > { %v728_v20 = vpop.xlane.xlu1 %727  ;;  %v722_v22 = vpop.xlane.xlu0 %721 }
 0x36c   : > { %v764_v25 = vmul.f32 0.0078125, %v728_v20  ;;  %v2009_v29 = vmul.f32 0.0078125, %v722_v22  ;;  %v828_v22 = vrot.slane %v1902_v23, %v827_v4 }
 0x36e   : > { %v780_v43 = vmul.f32 %v764_v25, %v764_v25  ;;  %v777_v27 = vmul.f32 %v2009_v29, %v2009_v29  ;;  %v796_v18 = vsub.f32 %v1974_v60, %v764_v25  ;;  %v793_v20 = vsub.f32 %v1972_v58, %v2009_v29 }
 0x36f   : > { %v724_v32 = vpop.xlane.xlu1 %723  ;;  %v750_v33 = vpop.xlane.xlu0 %749  ;;  %v840_v25 = vrot.slane %v1902_v23, %v839_v15 }
 0x370   : > { %v771_v36 = vmul.f32 0.0078125, %v750_v33  ;;  %v2013_v39 = vmul.f32 0.0078125, %v724_v32 }
 0x372   : > { %v787_v38 = vsub.f32 %v771_v36, %v779_v35  ;;  %v778_v48 = vmul.f32 %v2013_v39, %v2013_v39  ;;  %v794_v60 = vsub.f32 %v1978_v62, %v2013_v39 }
 0x373   : > { %v752_v44 = vpop.xlane.xlu1 %751  ;;  %v746_v31 = vpop.xlane.xlu0 %745 }
 0x374   : > { %v803_v42 = vadd.f32 1e-05, %v787_v38  ;;  %v772_v45 = vmul.f32 0.0078125, %v752_v44  ;;  %v769_v46 = vmul.f32 0.0078125, %v746_v31 }
 0x376   : > { %v788_v47 = vsub.f32 %v772_v45, %v780_v43  ;;  %v785_v40 = vsub.f32 %v769_v46, %v777_v27  ;;  %1448 = vrsqrt.f32 %v803_v42 }
 0x377   : > { %v748_v37 = vpop.xlane.xlu1 %747  ;;  %v734_v41 = vpop.xlane.xlu0 %733 }
 0x378   : > { %v804_v49 = vadd.f32 1e-05, %v788_v47  ;;  %v801_v50 = vadd.f32 1e-05, %v785_v40  ;;  %v770_v51 = vmul.f32 0.0078125, %v748_v37  ;;  %v2017_v30 = vmul.f32 0.0078125, %v734_v41 }
 0x37a   : > { %1450 = vrsqrt.f32 %v804_v49  ;;  %v786_v52 = vsub.f32 %v770_v51, %v778_v48  ;;  %v783_v26 = vmul.f32 %v2017_v30, %v2017_v30 }
 0x37b   : > { %1452 = vrsqrt.f32 %v801_v50  ;;  %v736_v53 = vpop.xlane.xlu1 %735  ;;  %v730_v54 = vpop.xlane.xlu0 %729 }
 0x37c   : > { %v802_v55 = vadd.f32 1e-05, %v786_v52  ;;  %v765_v57 = vmul.f32 0.0078125, %v730_v54  ;;  %v768_v17 = vmul.f32 0.0078125, %v736_v53  ;;  %v799_v53 = vsub.f32 %v1987_v3, %v2017_v30 }
 0x37e   : > { %1454 = vrsqrt.f32 %v802_v55  ;;  %v781_v28 = vmul.f32 %v765_v57, %v765_v57  ;;  %v784_v43 = vmul.f32 %v768_v17, %v768_v17  ;;  %v797_v62 = vsub.f32 %v1992_v59, %v765_v57 }
 0x37f   : > { %v732_v61 = vpop.xlane.xlu1 %731  ;;  %v754_v63 = vpop.xlane.xlu0 %753 }
 0x380   : > { %v766_v0 = vmul.f32 0.0078125, %v732_v61  ;;  %v773_v1 = vmul.f32 0.0078125, %v754_v63 }
 0x382   : > { %v789_v2 = vsub.f32 %v773_v1, %v781_v28  ;;  %v782_v10 = vmul.f32 %v766_v0, %v766_v0  ;;  %v798_v51 = vsub.f32 %v1998_v7, %v766_v0  ;;  %v800_v28 = vsub.f32 %v1994_v5, %v768_v17 }
 0x383   : > { %v756_v6 = vpop.xlane.xlu1 %755  ;;  %v758_v8 = vpop.xlane.xlu0 %757  ;;  %v879_v17 = vsub.s32 6, %v1899_v21 }
 0x384   : > { %v1449_v9 = vpop.eup %1448  ;;  %v805_v11 = vadd.f32 1e-05, %v789_v2  ;;  %v774_v12 = vmul.f32 0.0078125, %v756_v6  ;;  %v775_v13 = vmul.f32 0.0078125, %v758_v8 }
 0x385   : > { %v819_v32 = vmul.f32 %v1449_v9, %v795_v14 }
 0x386   : > { %1456 = vrsqrt.f32 %v805_v11  ;;  %v790_v34 = vsub.f32 %v774_v12, %v782_v10  ;;  %v791_v16 = vsub.f32 %v775_v13, %v783_v26 }
 0x387   : > { %v1451_v19 = vpop.eup %1450  ;;  %v760_v33 = vpop.xlane.xlu1 %759  ;;  %v831_v42 = vmul.f32 %v828_v22, %v819_v32 }
 0x388   : > { %v1453_v35 = vpop.eup %1452  ;;  %v820_v36 = vmul.f32 %v1451_v19, %v796_v18  ;;  %v806_v38 = vadd.f32 1e-05, %v790_v34  ;;  %v807_v56 = vadd.f32 1e-05, %v791_v16  ;;  %v776_v27 = vmul.f32 0.0078125, %v760_v33 }
 0x389   : > { %v817_v24 = vmul.f32 %v1453_v35, %v793_v20  ;;  %v843_v41 = vadd.f32 %v840_v25, %v831_v42  ;;  %v880_v18 = vrot.slane %v1902_v23, %v879_v17 }
 0x38a   : > { %v832_v44 = vmul.f32 %v828_v22, %v820_v36  ;;  %1458 = vrsqrt.f32 %v806_v38  ;;  %v792_v29 = vsub.f32 %v776_v27, %v784_v43 }
 0x38b   : > { %v1455_v31 = vpop.eup %1454  ;;  %v829_v58 = vmul.f32 %v828_v22, %v817_v24  ;;  %1460 = vrsqrt.f32 %v807_v56 }
 0x38c   : > { %v844_v45 = vadd.f32 %v840_v25, %v832_v44  ;;  %v818_v46 = vmul.f32 %v1455_v31, %v794_v60  ;;  %v808_v47 = vadd.f32 1e-05, %v792_v29 }
 0x38d   : > { %v841_v40 = vadd.f32 %v840_v25, %v829_v58 }
 0x38e   : > { %v830_v37 = vmul.f32 %v828_v22, %v818_v46  ;;  %1462 = vrsqrt.f32 %v808_v47 }
 0x38f   : > { %1464 = vtanh.f32 %v844_v45 }
 0x390   : > { %v842_v48 = vadd.f32 %v840_v25, %v830_v37  ;;  %1466 = vtanh.f32 %v841_v40 }
 0x392   : > { %1468 = vtanh.f32 %v842_v48 }
 0x393   : > { %v1457_v39 = vpop.eup %1456  ;;  %1470 = vtanh.f32 %v843_v41 }
 0x394   : > { %v821_v49 = vmul.f32 %v1457_v39, %v797_v62 }
 0x396   : > { %v833_v50 = vmul.f32 %v828_v22, %v821_v49 }
 0x397   : > { %v1459_v52 = vpop.eup %1458 }
 0x398   : > { %v1461_v54 = vpop.eup %1460  ;;  %v822_v55 = vmul.f32 %v1459_v52, %v798_v51  ;;  %v845_v63 = vadd.f32 %v840_v25, %v833_v50 }
 0x399   : > { %v823_v61 = vmul.f32 %v1461_v54, %v799_v53 }
 0x39a   : > { %v834_v1 = vmul.f32 %v828_v22, %v822_v55  ;;  %1472 = vtanh.f32 %v845_v63 }
 0x39b   : > { %v1463_v2 = vpop.eup %1462  ;;  %v835_v59 = vmul.f32 %v828_v22, %v823_v61 }
 0x39c   : > { %v1465_v57 = vpop.eup %1464  ;;  %v824_v4 = vmul.f32 %v1463_v2, %v800_v28  ;;  %v846_v26 = vadd.f32 %v840_v25, %v834_v1 }
 0x39d   : > { %v1467_v6 = vpop.eup %1466  ;;  %v847_v8 = vadd.f32 %v840_v25, %v835_v59 }
 0x39e   : > { %v836_v0 = vmul.f32 %v828_v22, %v824_v4  ;;  %1474 = vtanh.f32 %v846_v26 }
 0x39f   : > { %v1469_v7 = vpop.eup %1468  ;;  %1476 = vtanh.f32 %v847_v8 }
 0x3a0   : > { %v1471_v9 = vpop.eup %1470  ;;  %v857_v3 = vpack.c.bf16 %v1469_v7, %v1467_v6  ;;  %v848_v30 = vadd.f32 %v840_v25, %v836_v0 }
 0x3a1   : > { %v858_v10 = vpack.c.bf16 %v1465_v57, %v1471_v9 }
 0x3a2   : > { %1275 = vmatprep.mubr.bf16.mxu0 %v857_v3  ;;  %1478 = vtanh.f32 %v848_v30 }
 0x3a3   : > { %1276 = vmatmul.mubr.bf16.vlgmr.msra.gmra.mxu0 %v858_v10 }
 0x3a7   : > { %v1473_v5 = vpop.eup %1472 }
 0x3ab   : > { %v1475_v11 = vpop.eup %1474 }
 0x3ac   : > { %v859_v12 = vpack.c.bf16 %v1475_v11, %v1473_v5  ;;  %v1477_v13 = vpop.eup %1476 }
 0x3ae   : > { %1279 = vmatprep.mubr.bf16.mxu1 %v859_v12 }
 0x3af   : > { %v1479_v14 = vpop.eup %1478 }
 0x3b0   : > { %v860_v15 = vpack.c.bf16 %v1479_v14, %v1477_v13 }
 0x3b2   : > { %1280 = vmatmul.mubr.bf16.vlgmr.msra.gmra.mxu1 %v860_v15 }
 0x463   : > { %v1277_v34 = vpop.f32.mrf.mxu0 }
 0x464   : > { %v972_v16 = vadd.f32 %v1277_v34, %v880_v18 }
 0x465   : > { %v963_v19 = vpop.f32.mrf.mxu0 }
 0x466   : > { %996 = vst [vmem:[%s298_s24 + $0x10] sm:$0xff] %v972_v16  ;;  %v964_v20 = vadd.f32 %v963_v19, %v880_v18 }
 0x467   : > { %v1278_v22 = vpop.f32.mrf.mxu0 }
 0x468   : > { %994 = vst [vmem:[%s298_s24] sm:$0xff] %v964_v20  ;;  %v975_v32 = vadd.f32 %v1278_v22, %v880_v18 }
 0x469   : > { %v966_v33 = vpop.f32.mrf.mxu0 }
 0x46a   : > { %997 = vst [vmem:[%s298_s24 + $0x18] sm:$0xff] %v975_v32  ;;  %v967_v35 = vadd.f32 %v966_v33, %v880_v18 }
 0x46c   : > { %995 = vst [vmem:[%s298_s24 + $0x8] sm:$0xff] %v967_v35 }
 0x472   : > { %v1281_v36 = vpop.f32.mrf.mxu1 }
 0x473   : > { %v988_v21 = vadd.f32 %v1281_v36, %v880_v18 }
 0x474   : > { %v979_v23 = vpop.f32.mrf.mxu1 }
 0x475   : > { %1000 = vst [vmem:[%s298_s24 + $0x30] sm:$0xff] %v988_v21  ;;  %v980_v38 = vadd.f32 %v979_v23, %v880_v18 }
 0x476   : > { %v1282_v56 = vpop.f32.mrf.mxu1 }
 0x477   : > { %998 = vst [vmem:[%s298_s24 + $0x20] sm:$0xff] %v980_v38  ;;  %v991_v24 = vadd.f32 %v1282_v56, %v880_v18 }
 0x478   : > { %v982_v43 = vpop.f32.mrf.mxu1 }
 0x479   : > { %1001 = vst [vmem:[%s298_s24 + $0x38] sm:$0xff] %v991_v24  ;;  %v983_v27 = vadd.f32 %v982_v43, %v880_v18 }
 0x47b   : > { %999 = vst [vmem:[%s298_s24 + $0x28] sm:$0xff] %v983_v27 }
 0x47c   : > { %1625 = shalt.err (!%p1622_p10)
}
 0x47d   : > { %s1626_s7 = scalar_lea.hbm %s2046_s6, 1024  ;;  %s1630_s14 = scalar_lea.hbm %s2094_s5, 2048 }
 0x47e   : > { %p1627_p3 = scmp.ne.s32.totalorder %s2046_s6, %s1626_s7  ;;  %p1631_p11 = scmp.lt.s32.totalorder %s2046_s6, %s2094_s5 }
 0x47f   : > { %p1632_p4 = scmp.lt.s32.totalorder %s1630_s14, %s1626_s7 }
 0x480   : > { %p1628_p8 = pnand %p1627_p3, %p2112_p1 }
 0x481   : > { %p1633_p7 = por %p1632_p4, %p1631_p11 }
 0x482   : > { %p1629_p2 = pneg %p1628_p8 }
 0x484   : > { %p1634_p12 = pnand %p1633_p7, %p1629_p2 }
 0x486   : > { %1637 = shalt.err (!%p1634_p12)
}
 0x487   : > { %s1696_s23 = smov 128   ;;  %s1697_s28 = smov 8  }
 0x488   : > { %1317 = dma.vmem_to_hbm [thread:$0]  (%p2112_p1), %s2041_s26, 1024, %s2046_s6, %s1003_s13, %s1696_s23, %s1696_s23, %s1697_s28  }
 0x489 PF: > { %s1031_s30 = sand.u32 1, %s1672_s18   ;;  %p2113_p9 = scmp.ne.s32.totalorder %s2100_s25, 0 }
 0x48a   : > { %p2114_p13 = scmp.ge.s32.totalorder %s1684_s21, 2  ;;  %s1032_s16 = scalar_lea.sflag [#allocation4], %s1031_s30 }
 0x48c   : > { %p1337_p6 = pnand %p2114_p13, %p2113_p9 }
 0x48e   : > { %p1338_p0 = pneg %p1337_p6 }
 0x490   : > { %1667 = dma.done.wait (%p1338_p0), %s1032_s16, 1024  }
 0x491   : > { %1669 = vsyncadd (%p1338_p0), %s1032_s16, 4294966272  ;;  %p20_p5 = scmp.ge.s32.totalorder %s1816_s8, 4   ;;  %s2115_s18 = smov %s1676_s19 }
 0x492   : > { %s2116_s19 = smov %s1680_s20  ;;  %s2117_s20 = smov %s1832_s12 }
 0x493   : > { %s2118_s21 = smov %s1816_s8  ;;  %22 = sbr.rel (!%p20_p5) target bundleno = 7 (0x7), region = 101 }
 0x498   :  { %1037 = vsyncpa [#allocation3], 1 }
 0x499   :  { %1039 = vsyncpa [#allocation3 + $0x1], 1 }
 0x49a   :  { %1040 = vsyncpa [#allocation6], 1 }
 0x49b   :  { %1041 = vsyncpa [#allocation9], 1 }
 0x49c   :  { %1042 = vsyncpa [#allocation4], 1 }
 0x49d   :  { %1044 = vsyncpa [#allocation4 + $0x1], 1 }

</bundles_post_ra>
